<compile_context>
chip_gen: v5e
topology: v5e:2x2
jax: 0.10.0
libtpu: 0.0.40
codegen_flags: <defaults>
</compile_context>

<pallas_src>
import functools

import jax
import jax.numpy as jnp
from jax.experimental import pallas as pl
from jax.experimental.pallas import tpu as pltpu


def _round_up(v: int, m: int) -> int:
    return (v + m - 1) // m * m


def _make_mlp_kernel(num_layers: int, output_mode: str, n_out_valid: int):
    """Pallas kernel for an MLP with `num_layers` Linear layers.

    Kernel args: x_ref, w0, b0, w1, b1, ..., w{L-1}, b{L-1}, o_ref.
    ReLU after every layer except the last; final activation per output_mode.
    `n_out_valid` = number of real (un-padded) output lanes, used to mask the
    log-softmax reduction.
    """

    def kernel(*refs):
        x_ref = refs[0]
        o_ref = refs[-1]
        param_refs = refs[1:-1]  # alternating (w, b)

        h = x_ref[...].astype(jnp.float32)
        for li in range(num_layers):
            w = param_refs[2 * li][...]
            b = param_refs[2 * li + 1][...]
            h = jnp.dot(h, w, preferred_element_type=jnp.float32) + b
            if li < num_layers - 1:
                h = jnp.maximum(h, 0.0)  # ReLU

        if output_mode == "Log Softmax":
            # Mask padded lanes so they do not contribute to the reduction.
            lane = jax.lax.broadcasted_iota(jnp.int32, h.shape, dimension=1)
            h = jnp.where(lane < n_out_valid, h, jnp.float32(-1e30))
            m = jnp.max(h, axis=1, keepdims=True)
            s = h - m
            lse = jnp.log(jnp.sum(jnp.exp(s), axis=1, keepdims=True))
            h = s - lse
        elif output_mode == "Sigmoid":
            h = jax.nn.sigmoid(h)  # element-wise; padded lanes sliced off outside
        # else: raw logits (no final activation)

        o_ref[...] = h.astype(o_ref.dtype)

    return kernel


def ann_forward(x, weights, biases, output_mode="Log Softmax", block_batch=256):
    """Run the MLP forward pass with one Pallas call, tiled over the batch.

    x:       (B, n_input) float32
    weights: list of (in_i, out_i) float32 arrays (transposed vs. torch Linear)
    biases:  list of (out_i,) float32 arrays
    """
    B, n_in = x.shape
    num_layers = len(weights)
    n_out = weights[-1].shape[1]

    # ---- pad every width to a multiple of 128 lanes (exact: zero padding) ----
    n_in_p = _round_up(n_in, 128)
    padded_ws, padded_bs = [], []
    in_dim, in_dim_p = n_in, n_in_p
    widths_p = [n_in_p]
    for w, b in zip(weights, biases):
        out_dim = w.shape[1]
        out_dim_p = _round_up(out_dim, 128)
        wp = jnp.zeros((in_dim_p, out_dim_p), jnp.float32).at[:in_dim, :out_dim].set(w)
        bp = jnp.zeros((1, out_dim_p), jnp.float32).at[:, :out_dim].set(b)
        padded_ws.append(wp)
        padded_bs.append(bp)
        in_dim, in_dim_p = out_dim, out_dim_p
        widths_p.append(out_dim_p)
    n_out_p = in_dim_p

    # ---- pick a batch tile; shrink if it would blow the (v7x) VMEM budget ----
    TB = min(block_batch, _round_up(B, 8))
    weight_bytes = sum(int(wp.size) * 4 for wp in padded_ws) + sum(
        int(bp.size) * 4 for bp in padded_bs
    )

    def vmem_estimate(tb):
        # 2 buffers per streamed spec; weights get buffers too (constant map).
        act = 2 * tb * n_in_p * 4 + 2 * tb * n_out_p * 4 + tb * max(widths_p) * 4
        return act + 2 * weight_bytes

    VMEM_BUDGET = 32 * 1024 * 1024  # stay under the v7x scoped default
    while vmem_estimate(TB) > VMEM_BUDGET and TB > 8:
        TB //= 2
    TB = max(TB, 8)

    B_p = _round_up(B, TB)
    x_p = jnp.zeros((B_p, n_in_p), jnp.float32).at[:B, :n_in].set(x)

    grid = (B_p // TB,)

    # ---- specs: activations stream per batch tile, params stay resident ----
    inputs = [x_p]
    in_specs = [pl.BlockSpec((TB, n_in_p), lambda i: (i, 0))]
    for wp, bp in zip(padded_ws, padded_bs):
        inputs.append(wp)
        in_specs.append(pl.BlockSpec(wp.shape, lambda i: (0, 0)))
        inputs.append(bp)
        in_specs.append(pl.BlockSpec(bp.shape, lambda i: (0, 0)))
    out_specs = pl.BlockSpec((TB, n_out_p), lambda i: (i, 0))

    kernel = _make_mlp_kernel(num_layers, output_mode, n_out)

    flops = 2 * B_p * sum(a * b for a, b in zip(widths_p[:-1], widths_p[1:]))
    transcendentals = B_p * n_out_p if output_mode in ("Log Softmax", "Sigmoid") else 0
    bytes_accessed = (
        int(x_p.size) * 4 + weight_bytes + B_p * n_out_p * 4
    )

    out_padded = pl.pallas_call(
        kernel,
        out_shape=jax.ShapeDtypeStruct((B_p, n_out_p), jnp.float32),
        grid=grid,
        in_specs=in_specs,
        out_specs=out_specs,
        compiler_params=pltpu.CompilerParams(
            dimension_semantics=("parallel",),
        ),
        cost_estimate=pl.CostEstimate(
            flops=flops,
            transcendentals=transcendentals,
            bytes_accessed=bytes_accessed,
        ),
    )(*inputs)

    return out_padded[:B, :n_out]


def init_params(key, layer_sizes):
    """Deterministic nn.Linear-style init (uniform(-1/sqrt(fan_in), 1/sqrt(fan_in)))."""
    weights, biases = [], []
    for i in range(len(layer_sizes) - 1):
        fan_in, fan_out = layer_sizes[i], layer_sizes[i + 1]
        key, kw, kb = jax.random.split(key, 3)
        bound = 1.0 / jnp.sqrt(fan_in)
        # stored as (in, out) == torch weight (out, in) transposed
        w = jax.random.uniform(kw, (fan_in, fan_out), jnp.float32, -bound, bound)
        b = jax.random.uniform(kb, (fan_out,), jnp.float32, -bound, bound)
        weights.append(w)
        biases.append(b)
    return weights, biases


def reference_forward(x, weights, biases, output_mode="Log Softmax"):
    h = x
    for i, (w, b) in enumerate(zip(weights, biases)):
        h = h @ w + b
        if i < len(weights) - 1:
            h = jnp.maximum(h, 0.0)
    if output_mode == "Log Softmax":
        h = jax.nn.log_softmax(h, axis=1)
    elif output_mode == "Sigmoid":
        h = jax.nn.sigmoid(h)
    return h


if __name__ == "__main__":
    # ANNModelConfig equivalent
    n_input = 32
    hidden_layer_nodes = [64, 32]
    n_output = 16
    output_mode = "Log Softmax"
    layer_sizes = [n_input] + hidden_layer_nodes + [n_output]

    batch = 8
    key = jax.random.PRNGKey(0)
    key, kx = jax.random.split(key)
    x = jax.random.normal(kx, (batch, n_input), jnp.float32)

    weights, biases = init_params(key, layer_sizes)

    out = ann_forward(x, weights, biases, output_mode)
    out = jax.block_until_ready(out)

    ref = reference_forward(x, weights, biases, output_mode)
    assert out.shape == (batch, n_output)
    assert jnp.allclose(out, ref, atol=1e-5, rtol=1e-5), "mismatch vs JAX reference"

    print("KERNEL_OK")
</pallas_src>

<mosaic_0001>
module attributes {stable_mosaic.version = 11 : i64} {
  func.func @kernel(%arg0: i32, %arg1: memref<8x128xf32, #tpu.memory_space<vmem>>, %arg2: memref<128x128xf32, #tpu.memory_space<vmem>>, %arg3: memref<1x128xf32, #tpu.memory_space<vmem>>, %arg4: memref<128x128xf32, #tpu.memory_space<vmem>>, %arg5: memref<1x128xf32, #tpu.memory_space<vmem>>, %arg6: memref<128x128xf32, #tpu.memory_space<vmem>>, %arg7: memref<1x128xf32, #tpu.memory_space<vmem>>, %arg8: memref<8x128xf32, #tpu.memory_space<vmem>>) attributes {dimension_semantics = [#tpu.dimension_semantics<parallel>], iteration_bounds = array<i64: 1>, scalar_prefetch = 0 : i64, scratch_operands = 0 : i64, tpu.core_type = #tpu.core_type<tc>, window_params = [{transform_indices = @transform_0, window_bounds = array<i64: 8, 128>}, {pipeline_mode = #tpu.pipeline_mode<synchronous>, transform_indices = @transform_1, window_bounds = array<i64: 128, 128>}, {pipeline_mode = #tpu.pipeline_mode<synchronous>, transform_indices = @transform_2, window_bounds = array<i64: 1, 128>}, {pipeline_mode = #tpu.pipeline_mode<synchronous>, transform_indices = @transform_3, window_bounds = array<i64: 128, 128>}, {pipeline_mode = #tpu.pipeline_mode<synchronous>, transform_indices = @transform_4, window_bounds = array<i64: 1, 128>}, {pipeline_mode = #tpu.pipeline_mode<synchronous>, transform_indices = @transform_5, window_bounds = array<i64: 128, 128>}, {pipeline_mode = #tpu.pipeline_mode<synchronous>, transform_indices = @transform_6, window_bounds = array<i64: 1, 128>}, {transform_indices = @transform_7, window_bounds = array<i64: 8, 128>}]} {
    %c0 = arith.constant 0 : index
    %c0_0 = arith.constant 0 : index
    %0 = vector.load %arg1[%c0, %c0_0] : memref<8x128xf32, #tpu.memory_space<vmem>>, vector<8x128xf32>
    %c0_1 = arith.constant 0 : index
    %c0_2 = arith.constant 0 : index
    %1 = vector.load %arg2[%c0_1, %c0_2] : memref<128x128xf32, #tpu.memory_space<vmem>>, vector<128x128xf32>
    %c0_3 = arith.constant 0 : index
    %c0_4 = arith.constant 0 : index
    %2 = vector.load %arg3[%c0_3, %c0_4] : memref<1x128xf32, #tpu.memory_space<vmem>>, vector<1x128xf32>
    %cst = arith.constant dense<0.000000e+00> : vector<8x128xf32>
    %3 = tpu.matmul %0, %1, %cst {dimension_numbers = #tpu.dot_dimension_numbers<[1], [0], [0], [1], [0, 0, 1, 1], [], []>} : vector<8x128xf32>, vector<128x128xf32>, vector<8x128xf32> -> vector<8x128xf32>
    %4 = vector.broadcast %2 : vector<1x128xf32> to vector<8x128xf32>
    %5 = arith.addf %3, %4 : vector<8x128xf32>
    %cst_5 = arith.constant 0.000000e+00 : f32
    %6 = vector.broadcast %cst_5 : f32 to vector<8x128xf32>
    %7 = arith.maximumf %5, %6 : vector<8x128xf32>
    %c0_6 = arith.constant 0 : index
    %c0_7 = arith.constant 0 : index
    %8 = vector.load %arg4[%c0_6, %c0_7] : memref<128x128xf32, #tpu.memory_space<vmem>>, vector<128x128xf32>
    %c0_8 = arith.constant 0 : index
    %c0_9 = arith.constant 0 : index
    %9 = vector.load %arg5[%c0_8, %c0_9] : memref<1x128xf32, #tpu.memory_space<vmem>>, vector<1x128xf32>
    %cst_10 = arith.constant dense<0.000000e+00> : vector<8x128xf32>
    %10 = tpu.matmul %7, %8, %cst_10 {dimension_numbers = #tpu.dot_dimension_numbers<[1], [0], [0], [1], [0, 0, 1, 1], [], []>} : vector<8x128xf32>, vector<128x128xf32>, vector<8x128xf32> -> vector<8x128xf32>
    %11 = vector.broadcast %9 : vector<1x128xf32> to vector<8x128xf32>
    %12 = arith.addf %10, %11 : vector<8x128xf32>
    %cst_11 = arith.constant 0.000000e+00 : f32
    %13 = vector.broadcast %cst_11 : f32 to vector<8x128xf32>
    %14 = arith.maximumf %12, %13 : vector<8x128xf32>
    %c0_12 = arith.constant 0 : index
    %c0_13 = arith.constant 0 : index
    %15 = vector.load %arg6[%c0_12, %c0_13] : memref<128x128xf32, #tpu.memory_space<vmem>>, vector<128x128xf32>
    %c0_14 = arith.constant 0 : index
    %c0_15 = arith.constant 0 : index
    %16 = vector.load %arg7[%c0_14, %c0_15] : memref<1x128xf32, #tpu.memory_space<vmem>>, vector<1x128xf32>
    %cst_16 = arith.constant dense<0.000000e+00> : vector<8x128xf32>
    %17 = tpu.matmul %14, %15, %cst_16 {dimension_numbers = #tpu.dot_dimension_numbers<[1], [0], [0], [1], [0, 0, 1, 1], [], []>} : vector<8x128xf32>, vector<128x128xf32>, vector<8x128xf32> -> vector<8x128xf32>
    %18 = vector.broadcast %16 : vector<1x128xf32> to vector<8x128xf32>
    %19 = arith.addf %17, %18 : vector<8x128xf32>
    %20 = tpu.iota {dimensions = array<i32: 1>} : vector<8x128xi32>
    %c16_i32 = arith.constant 16 : i32
    %21 = vector.broadcast %c16_i32 : i32 to vector<8x128xi32>
    %22 = arith.cmpi slt, %20, %21 : vector<8x128xi32>
    %cst_17 = arith.constant -1.000000e+30 : f32
    %23 = vector.broadcast %cst_17 : f32 to vector<8x128xf32>
    %24 = arith.select %22, %19, %23 : vector<8x128xi1>, vector<8x128xf32>
    %cst_18 = arith.constant dense<0xFF800000> : vector<8xf32>
    %25 = vector.multi_reduction <maximumf>, %24, %cst_18 [1] : vector<8x128xf32> to vector<8xf32>
    %26 = vector.shape_cast %25 : vector<8xf32> to vector<8x1xf32>
    %27 = vector.broadcast %26 : vector<8x1xf32> to vector<8x128xf32>
    %28 = arith.subf %24, %27 : vector<8x128xf32>
    %29 = math.exp %28 : vector<8x128xf32>
    %cst_19 = arith.constant dense<0.000000e+00> : vector<8xf32>
    %30 = vector.multi_reduction <add>, %29, %cst_19 [1] : vector<8x128xf32> to vector<8xf32>
    %31 = vector.shape_cast %30 : vector<8xf32> to vector<8x1xf32>
    %32 = math.log %31 : vector<8x1xf32>
    %33 = vector.broadcast %32 : vector<8x1xf32> to vector<8x128xf32>
    %34 = arith.subf %28, %33 : vector<8x128xf32>
    %c0_20 = arith.constant 0 : index
    %c0_21 = arith.constant 0 : index
    %35 = vector.load %arg8[%c0_20, %c0_21] : memref<8x128xf32, #tpu.memory_space<vmem>>, vector<8x128xf32>
    tpu.vector_store %arg8[%c0_20, %c0_21], %34 {strides = array<i32>} : memref<8x128xf32, #tpu.memory_space<vmem>>, vector<8x128xf32>,
    return
  }
  func.func @transform_0(%arg0: i32) -> (i32, i32) {
    %c0_i32 = arith.constant 0 : i32
    %c0_i32_0 = arith.constant 0 : i32
    return %arg0, %c0_i32 : i32, i32
  }
  func.func @transform_1(%arg0: i32) -> (i32, i32) {
    %c0_i32 = arith.constant 0 : i32
    %c0_i32_0 = arith.constant 0 : i32
    %c0_i32_1 = arith.constant 0 : i32
    return %c0_i32, %c0_i32_0 : i32, i32
  }
  func.func @transform_2(%arg0: i32) -> (i32, i32) {
    %c0_i32 = arith.constant 0 : i32
    %c0_i32_0 = arith.constant 0 : i32
    %c0_i32_1 = arith.constant 0 : i32
    return %c0_i32, %c0_i32_0 : i32, i32
  }
  func.func @transform_3(%arg0: i32) -> (i32, i32) {
    %c0_i32 = arith.constant 0 : i32
    %c0_i32_0 = arith.constant 0 : i32
    %c0_i32_1 = arith.constant 0 : i32
    return %c0_i32, %c0_i32_0 : i32, i32
  }
  func.func @transform_4(%arg0: i32) -> (i32, i32) {
    %c0_i32 = arith.constant 0 : i32
    %c0_i32_0 = arith.constant 0 : i32
    %c0_i32_1 = arith.constant 0 : i32
    return %c0_i32, %c0_i32_0 : i32, i32
  }
  func.func @transform_5(%arg0: i32) -> (i32, i32) {
    %c0_i32 = arith.constant 0 : i32
    %c0_i32_0 = arith.constant 0 : i32
    %c0_i32_1 = arith.constant 0 : i32
    return %c0_i32, %c0_i32_0 : i32, i32
  }
  func.func @transform_6(%arg0: i32) -> (i32, i32) {
    %c0_i32 = arith.constant 0 : i32
    %c0_i32_0 = arith.constant 0 : i32
    %c0_i32_1 = arith.constant 0 : i32
    return %c0_i32, %c0_i32_0 : i32, i32
  }
  func.func @transform_7(%arg0: i32) -> (i32, i32) {
    %c0_i32 = arith.constant 0 : i32
    %c0_i32_0 = arith.constant 0 : i32
    return %arg0, %c0_i32 : i32, i32
  }
}

</mosaic_0001>

<bundles_post_ra>
// kernel: tpu_custom_call.1
= control target key start
LH: loop header
LB: loop body
LE: loop exit
PB: predicated region body
PF: predicated region fallthrough
CT: control target
= control target key end

     0   :  { %12 = vsyncpa [#allocation3], 0  ;;  %s458_s0 = inlined_call_operand.hbm [shape: f32[8,128], index: 0, kind: input, shape index: {}]   ;;  %s459_s1 = inlined_call_operand.hbm [shape: f32[128,128], index: 1, kind: input, shape index: {}]   ;;  %s460_s2 = inlined_call_operand.vmem [shape: f32[1,128], index: 2, kind: input, shape index: {}]   ;;  %s461_s3 = inlined_call_operand.hbm [shape: f32[128,128], index: 3, kind: input, shape index: {}]   ;;  %s462_s4 = inlined_call_operand.vmem [shape: f32[1,128], index: 4, kind: input, shape index: {}]   ;;  %s463_s5 = inlined_call_operand.hbm [shape: f32[128,128], index: 5, kind: input, shape index: {}]   ;;  %s464_s6 = inlined_call_operand.vmem [shape: f32[1,128], index: 6, kind: input, shape index: {}]   ;;  %s465_s7 = inlined_call_operand.hbm [shape: f32[8,128], index: 7, kind: output, shape index: {}]  }
   0x1   :  { %13 = vsyncpa [#allocation6], 0 }
   0x2   :  { %14 = vsyncpa [#allocation9], 0  ;;  %s31_s26 = sshll.u32 %s459_s1, 4  ;;  %s32_s26 = int_to_ptr.hbm [resolvable:$true] %s31_s26 }
   0x3   :  { %15 = vsyncpa [#allocation4], 0  ;;  %s387_s27 = smov [#allocation5]   ;;  %s21_s8 = sshll.u32 %s458_s0, 4  ;;  %s22_s8 = int_to_ptr.hbm [resolvable:$true] %s21_s8 }
   0x4   :  { %s33_s28 = sshll.u32 %s387_s27, 4  ;;  %s388_s9 = smov 128   ;;  %s34_s28 = int_to_ptr.vmem [resolvable:$true] %s33_s28 }
   0x5   :  { %s389_s10 = smov 8   ;;  %s390_s11 = smov [#allocation2]  }
   0x6   :  { %39 = dma.hbm_to_vmem [thread:$0]  %s32_s26, 2048, %s34_s28, [#allocation6], %s388_s9, %s388_s9, %s389_s10  }
   0x7   :  { %s23_s12 = sshll.u32 %s390_s11, 4  ;;  %s46_s15 = sshll.u32 %s461_s3, 4  ;;  %s24_s12 = int_to_ptr.vmem [resolvable:$true] %s23_s12  ;;  %s47_s15 = int_to_ptr.hbm [resolvable:$true] %s46_s15 }
   0x8   :  { %26 = dma.hbm_to_vmem [thread:$0]  %s22_s8, 128, %s24_s12, [#allocation3]  }
   0x9   :  { %s61_s17 = sshll.u32 %s463_s5, 4  ;;  %s391_s18 = smov [#allocation7]   ;;  %s62_s17 = int_to_ptr.hbm [resolvable:$true] %s61_s17 }
   0xa   :  { %s48_s19 = sshll.u32 %s391_s18, 4  ;;  %s392_s0 = smov [#allocation8]   ;;  %s49_s19 = int_to_ptr.vmem [resolvable:$true] %s48_s19 }
   0xb   :  { %54 = dma.hbm_to_vmem [thread:$0]  %s47_s15, 2048, %s49_s19, [#allocation6], %s388_s9, %s388_s9, %s389_s10  }
   0xc   :  { %s63_s20 = sshll.u32 %s392_s0, 4  ;;  %s64_s20 = int_to_ptr.vmem [resolvable:$true] %s63_s20 }
   0xd   :  { %69 = dma.hbm_to_vmem [thread:$0]  %s62_s17, 2048, %s64_s20, [#allocation9], %s388_s9, %s388_s9, %s389_s10  }
   0xe   :  { %379 = dma.done.wait [#allocation3], 128  }
   0xf   :  { %380 = vsyncadd [#allocation3], 4294967168 }
  0x10   :  { %381 = dma.done.wait [#allocation6], 4096  }
  0x11   :  { %382 = vsyncadd [#allocation6], 4294963200 }
  0x12   :  { %383 = dma.done.wait [#allocation9], 2048  }
  0x13   :  { %384 = vsyncadd [#allocation9], 4294965248  ;;  %v104_v0 = vld [vmem:[#allocation5 + $0x78] sm:$0xff]  ;;  %v103_v1 = vld [vmem:[#allocation5 + $0x70] sm:$0xff]  ;;  %v211_v57 = vlaneseq }
  0x14   :  { %109 = vmatpush.msra.mxu0 %v104_v0  ;;  %v102_v2 = vld [vmem:[#allocation5 + $0x68] sm:$0xff]  ;;  %v101_v3 = vld [vmem:[#allocation5 + $0x60] sm:$0xff]  ;;  %v145_v4 = vld [vmem:[#allocation7 + $0x78] sm:$0xff] }
  0x15   :  { %v100_v5 = vld [vmem:[#allocation5 + $0x58] sm:$0xff]  ;;  %150 = vmatpush.msra.mxu1 %v145_v4  ;;  %v144_v6 = vld [vmem:[#allocation7 + $0x70] sm:$0xff]  ;;  %v143_v7 = vld [vmem:[#allocation7 + $0x68] sm:$0xff]  ;;  %v212_v58 = vand.u32 127, %v211_v57 }
  0x16   :  { %110 = vmatpush.msra.mxu0 %v103_v1  ;;  %v99_v8 = vld [vmem:[#allocation5 + $0x50] sm:$0xff]  ;;  %v142_v9 = vld [vmem:[#allocation7 + $0x60] sm:$0xff]  ;;  %v98_v10 = vld [vmem:[#allocation5 + $0x48] sm:$0xff] }
  0x17   :  { %151 = vmatpush.msra.mxu1 %v144_v6  ;;  %v141_v11 = vld [vmem:[#allocation7 + $0x58] sm:$0xff]  ;;  %v97_v12 = vld [vmem:[#allocation5 + $0x40] sm:$0xff]  ;;  %v140_v13 = vld [vmem:[#allocation7 + $0x50] sm:$0xff]  ;;  %vm213_vm0 = vcmp.lt.s32.totalorder %v212_v58, 16 }
  0x18   :  { %111 = vmatpush.msra.mxu0 %v102_v2  ;;  %v96_v14 = vld [vmem:[#allocation5 + $0x38] sm:$0xff]  ;;  %v139_v15 = vld [vmem:[#allocation7 + $0x48] sm:$0xff]  ;;  %v95_v16 = vld [vmem:[#allocation5 + $0x30] sm:$0xff] }
  0x19   :  { %152 = vmatpush.msra.mxu1 %v143_v7  ;;  %v138_v17 = vld [vmem:[#allocation7 + $0x40] sm:$0xff]  ;;  %v94_v18 = vld [vmem:[#allocation5 + $0x28] sm:$0xff]  ;;  %v137_v19 = vld [vmem:[#allocation7 + $0x38] sm:$0xff] }
  0x1a   :  { %112 = vmatpush.msra.mxu0 %v101_v3  ;;  %v93_v20 = vld [vmem:[#allocation5 + $0x20] sm:$0xff]  ;;  %v136_v21 = vld [vmem:[#allocation7 + $0x30] sm:$0xff]  ;;  %v92_v22 = vld [vmem:[#allocation5 + $0x18] sm:$0xff] }
  0x1b   :  { %153 = vmatpush.msra.mxu1 %v142_v9  ;;  %v135_v23 = vld [vmem:[#allocation7 + $0x28] sm:$0xff]  ;;  %v91_v24 = vld [vmem:[#allocation5 + $0x10] sm:$0xff]  ;;  %v134_v25 = vld [vmem:[#allocation7 + $0x20] sm:$0xff] }
  0x1c   :  { %113 = vmatpush.msra.mxu0 %v100_v5  ;;  %v90_v26 = vld [vmem:[#allocation5 + $0x8] sm:$0xff]  ;;  %v133_v27 = vld [vmem:[#allocation7 + $0x18] sm:$0xff]  ;;  %v89_v28 = vld [vmem:[#allocation5] sm:$0xff] }
  0x1d   :  { %154 = vmatpush.msra.mxu1 %v141_v11  ;;  %v88_v29 = vld [vmem:[#allocation2] sm:$0xff]  ;;  %v132_v30 = vld [vmem:[#allocation7 + $0x10] sm:$0xff]  ;;  %v131_v31 = vld [vmem:[#allocation7 + $0x8] sm:$0xff] }
  0x1e   :  { %114 = vmatpush.msra.mxu0 %v99_v8  ;;  %v130_v32 = vld [vmem:[#allocation7] sm:$0xff]  ;;  %v186_v33 = vld [vmem:[#allocation8 + $0x78] sm:$0xff]  ;;  %v185_v34 = vld [vmem:[#allocation8 + $0x70] sm:$0xff] }
  0x1f   :  { %155 = vmatpush.msra.mxu1 %v140_v13  ;;  %191 = vmatpush.msra.mxu2 %v186_v33  ;;  %v184_v35 = vld [vmem:[#allocation8 + $0x68] sm:$0xff]  ;;  %v183_v36 = vld [vmem:[#allocation8 + $0x60] sm:$0xff]  ;;  %v182_v37 = vld [vmem:[#allocation8 + $0x58] sm:$0xff] }
  0x20   :  { %115 = vmatpush.msra.mxu0 %v98_v10  ;;  %v181_v38 = vld [vmem:[#allocation8 + $0x50] sm:$0xff]  ;;  %v180_v39 = vld [vmem:[#allocation8 + $0x48] sm:$0xff]  ;;  %v179_v40 = vld [vmem:[#allocation8 + $0x40] sm:$0xff] }
  0x21   :  { %156 = vmatpush.msra.mxu1 %v139_v15  ;;  %192 = vmatpush.msra.mxu2 %v185_v34  ;;  %v178_v41 = vld [vmem:[#allocation8 + $0x38] sm:$0xff]  ;;  %v177_v42 = vld [vmem:[#allocation8 + $0x30] sm:$0xff]  ;;  %v176_v43 = vld [vmem:[#allocation8 + $0x28] sm:$0xff] }
  0x22   :  { %116 = vmatpush.msra.mxu0 %v97_v12  ;;  %v175_v44 = vld [vmem:[#allocation8 + $0x20] sm:$0xff]  ;;  %v174_v45 = vld [vmem:[#allocation8 + $0x18] sm:$0xff]  ;;  %v173_v50 = vld [vmem:[#allocation8 + $0x10] sm:$0xff] }
  0x23   :  { %157 = vmatpush.msra.mxu1 %v138_v17  ;;  %193 = vmatpush.msra.mxu2 %v184_v35  ;;  %v252_v46 = vld [vmem:[%s460_s2] ss:$0 sm:$0xff]  ;;  %v172_v51 = vld [vmem:[#allocation8 + $0x8] sm:$0xff]  ;;  %v171_v52 = vld [vmem:[#allocation8] sm:$0xff] }
  0x24   :  { %117 = vmatpush.msra.mxu0 %v96_v14  ;;  %v253_v53 = vld [vmem:[%s462_s4] ss:$0 sm:$0xff]  ;;  %s393_s4 = smov [#allocation10]  }
  0x25   :  { %158 = vmatpush.msra.mxu1 %v137_v19  ;;  %194 = vmatpush.msra.mxu2 %v183_v36  ;;  %v254_v59 = vld [vmem:[%s464_s6] ss:$0 sm:$0xff]  ;;  %s231_s24 = sshll.u32 %s393_s4, 4  ;;  %s233_s6 = sshll.u32 %s465_s7, 4  ;;  %s232_s24 = int_to_ptr.vmem [resolvable:$true] %s231_s24  ;;  %s234_s6 = int_to_ptr.hbm [resolvable:$true] %s233_s6 }
  0x26   :  { %118 = vmatpush.msra.mxu0 %v95_v16 }
  0x27   :  { %159 = vmatpush.msra.mxu1 %v136_v21  ;;  %195 = vmatpush.msra.mxu2 %v182_v37 }
  0x28   :  { %119 = vmatpush.msra.mxu0 %v94_v18 }
  0x29   :  { %160 = vmatpush.msra.mxu1 %v135_v23  ;;  %196 = vmatpush.msra.mxu2 %v181_v38 }
  0x2a   :  { %120 = vmatpush.msra.mxu0 %v93_v20 }
  0x2b   :  { %161 = vmatpush.msra.mxu1 %v134_v25  ;;  %197 = vmatpush.msra.mxu2 %v180_v39 }
  0x2c   :  { %121 = vmatpush.msra.mxu0 %v92_v22 }
  0x2d   :  { %162 = vmatpush.msra.mxu1 %v133_v27  ;;  %198 = vmatpush.msra.mxu2 %v179_v40 }
  0x2e   :  { %122 = vmatpush.msra.mxu0 %v91_v24 }
  0x2f   :  { %163 = vmatpush.msra.mxu1 %v132_v30  ;;  %199 = vmatpush.msra.mxu2 %v178_v41 }
  0x30   :  { %123 = vmatpush.msra.mxu0 %v90_v26 }
  0x31   :  { %164 = vmatpush.msra.mxu1 %v131_v31  ;;  %200 = vmatpush.msra.mxu2 %v177_v42 }
  0x32   :  { %124 = vmatpush.msra.mxu0 %v89_v28 }
  0x33   :  { %125 = vmatmul.f32.vlgmr.msra.gmra.mxu0 %v88_v29  ;;  %165 = vmatpush.msra.mxu1 %v130_v32 }
  0x34   :  { %201 = vmatpush.msra.mxu2 %v176_v43 }
  0x36   :  { %202 = vmatpush.msra.mxu2 %v175_v44 }
  0x38   :  { %203 = vmatpush.msra.mxu2 %v174_v45 }
  0x3a   :  { %204 = vmatpush.msra.mxu2 %v173_v50 }
  0x3c   :  { %205 = vmatpush.msra.mxu2 %v172_v51 }
  0x3e   :  { %206 = vmatpush.msra.mxu2 %v171_v52 }
  0xb0   :  { %v126_v47 = vpop.f32.mrf.mxu0 }
  0xb1   :  { %v127_v48 = vadd.f32 %v252_v46, %v126_v47 }
  0xb3   :  { %v129_v49 = vmax.f32 %v127_v48, 0.0 }
  0xb5   :  { %166 = vmatmul.f32.vlgmr.msra.gmra.mxu1 %v129_v49 }
 0x132   :  { %v167_v54 = vpop.f32.mrf.mxu1 }
 0x133   :  { %v168_v55 = vadd.f32 %v253_v53, %v167_v54 }
 0x135   :  { %v170_v56 = vmax.f32 %v168_v55, 0.0 }
 0x137   :  { %207 = vmatmul.f32.vlgmr.msra.gmra.mxu2 %v170_v56 }
 0x1ba   :  { %v208_v60 = vpop.f32.mrf.mxu2 }
 0x1bb   :  { %v209_v61 = vadd.f32 %v254_v59, %v208_v60 }
 0x1bd   :  { %v214_v62 = vsel %vm213_vm0, %v209_v61, -1e+30 }
 0x1be   :  { %215 = vmax.xlane.f32.xlu0 %v214_v62 }
 0x231   :  { %v216_v63 = vpop.xlane.xlu0 %215 }
 0x232   :  { %v217_v0 = vsub.f32 %v214_v62, %v216_v63 }
 0x234   :  { %v218_v1 = vmul.f32 1.442695, %v217_v0 }
 0x236   :  { %255 = vpow2.f32 %v218_v1 }
 0x23c   :  { %v256_v2 = vpop.eup %255 }
 0x23d   :  { %220 = vadd.xlane.f32.xlu0 %v256_v2 }
 0x2b0   :  { %v221_v3 = vpop.xlane.xlu0 %220 }
 0x2b1   :  { %257 = vlog2.f32 %v221_v3 }
 0x2b7   :  { %v258_v4 = vpop.eup %257 }
 0x2b8   :  { %v223_v5 = vmul.f32 0.6931472, %v258_v4 }
 0x2ba   :  { %v224_v6 = vsub.f32 %v217_v0, %v223_v5 }
 0x2bc   :  { %225 = vst [vmem:[#allocation10] sm:$0xff] %v224_v6 }
 0x2bd   :  { %236 = dma.vmem_to_hbm [thread:$0]  %s232_s24, 128, %s234_s6, [#allocation4]  }
 0x2be   :  { %385 = dma.done.wait [#allocation4], 128  }
 0x2bf   :  { %386 = vsyncadd [#allocation4], 4294967168 }
 0x2c0   :  { %241 = vsyncpa [#allocation3], 1 }
 0x2c1   :  { %242 = vsyncpa [#allocation6], 1 }
 0x2c2   :  { %243 = vsyncpa [#allocation9], 1 }
 0x2c3   :  { %244 = vsyncpa [#allocation4], 1 }

</bundles_post_ra>
